<compile_context>
chip_gen: v5e
topology: v5e:2x2
jax: 0.10.0
libtpu: 0.0.40
codegen_flags: <defaults>
</compile_context>

<pallas_src>
import functools

import jax
import jax.numpy as jnp
from jax import lax
from jax.experimental import pallas as pl
from jax.experimental.pallas import tpu as pltpu


def _reduce_state_kernel(idx_ref, feat_ref, out_ref, sum_acc, cnt_acc, *,
                         reducer, num_n_tiles, rows_in_last, idx_resident):
    # idx_ref : int32 segment id per node (lane-major)
    #             resident: (num_n_tiles, 1, tile_n) ; streamed: (1, 1, tile_n)
    # feat_ref: (tile_n, tile_d)        feature tile (last n/d blocks may be partial)
    # out_ref : (s_pad, tile_d)         resident output block (constant across n)
    # sum_acc : (s_pad, tile_d) f32     segment partial sums
    # cnt_acc : (s_pad, 1)      f32     segment counts (mean only)
    n_step = pl.program_id(1)
    n_last = num_n_tiles - 1

    @pl.when(n_step == 0)
    def _():
        sum_acc[...] = jnp.zeros_like(sum_acc)
        if reducer == "mean":
            cnt_acc[...] = jnp.zeros_like(cnt_acc)

    s_pad = out_ref.shape[0]
    tile_n, _ = feat_ref.shape

    if idx_resident:
        idx_tile = idx_ref[n_step]          # (1, tile_n), dynamic first-axis index
    else:
        idx_tile = idx_ref[0]               # (1, tile_n)

    seg_iota = lax.broadcasted_iota(jnp.int32, (s_pad, tile_n), 0)
    mask = seg_iota == idx_tile                                    # (s_pad, tile_n)

    feat = feat_ref[...]
    if feat.dtype == jnp.bfloat16:
        mm_dtype = jnp.bfloat16        # bf16-native MXU; one-hot 0/1 exact in bf16
    else:
        mm_dtype = jnp.float32
        if feat.dtype != jnp.float32:
            feat = feat.astype(jnp.float32)

    if rows_in_last != tile_n:
        # Last n-block is partial: rows past N hold unspecified data (could be
        # NaN/Inf); zero them so 0 * garbage cannot poison the MXU accumulation.
        limit = jnp.where(n_step == n_last, rows_in_last, tile_n)
        row_valid = lax.broadcasted_iota(jnp.int32, (tile_n, 1), 0) < limit
        feat = jnp.where(row_valid, feat, jnp.zeros((), feat.dtype))

    one_hot = mask.astype(mm_dtype)

    # Segment partial sums on the MXU (expected binding unit: MXU weight feed),
    # accumulated in f32.
    sum_acc[...] += jnp.dot(one_hot, feat, preferred_element_type=jnp.float32)

    if reducer == "mean":
        # Counts from the same one-hot via a cross-lane reduction (f32 accum).
        cnt_acc[...] += jnp.sum(one_hot, axis=1, keepdims=True, dtype=jnp.float32)

    @pl.when(n_step == n_last)
    def _():
        if reducer == "mean":
            denom = jnp.maximum(cnt_acc[...], 1.0)      # empty segments -> 0
            # Exact divide: epilogue runs once per output block, so this is free
            # and matches torch_scatter's mean bit-for-bit in f32.
            out_ref[...] = (sum_acc[...] / denom).astype(out_ref.dtype)
        else:  # "sum"
            out_ref[...] = sum_acc[...].astype(out_ref.dtype)


def _round_up(x, m):
    return ((x + m - 1) // m) * m


def _cdiv(a, b):
    return (a + b - 1) // b


def reduce_state(features, index, num_segments, *, reducer="mean",
                 tile_n=1024, tile_d=512, feature_buffers=None):
    """Pallas equivalent of ReduceState.forward(features, index)."""
    if reducer not in ("mean", "sum"):
        # TODO(synk): 'min'/'max'/'mul' scatter reducers not implemented here.
        raise NotImplementedError(reducer)

    N, D = features.shape
    out_dtype = features.dtype

    # Segment axis padded to a sublane multiple; kept fully resident.
    s_pad = _round_up(max(num_segments, 1), 8)
    # TODO(synk): tile S (extra grid axis) before num_segments grows into the
    # hundreds+, to bound the one-hot / accumulator VMEM footprint (v7x: 64 MiB).

    # Feature (lane) axis: tile_d multiple of 128, >= 256 where possible. The
    # feature matrix itself is NOT padded; tail columns of the last partial
    # d-block land in output padding and are sliced off below.
    tile_d = max(128, _round_up(tile_d, 128))
    d_cap = _round_up(D, 128)
    tile_d = min(tile_d, d_cap)
    d_tiles = _cdiv(D, tile_d)
    if d_tiles == 1 and d_cap >= 512:
        # Guarantee >= 2 steps on the parallel d axis (megacore sharding on
        # 2-TensorCore chips) without dropping tile_d below 256.
        tile_d = _round_up(_cdiv(d_cap, 2), 128)
        d_tiles = _cdiv(D, tile_d)
    d_out = d_tiles * tile_d

    # Node (reduction) axis: tile_n multiple of 128 (MXU contraction depth).
    # Only the cheap 1-D index is padded (sentinel == s_pad -> all-zero one-hot
    # row); the (N, D) feature matrix is consumed in place, no jnp.pad copy.
    tile_n = max(128, _round_up(tile_n, 128))
    tile_n = min(tile_n, _round_up(N, 128))
    num_n_tiles = _cdiv(N, tile_n)
    n_pad = num_n_tiles * tile_n
    rows_in_last = N - (num_n_tiles - 1) * tile_n

    idx_p = jnp.pad(index.astype(jnp.int32), (0, n_pad - N), constant_values=s_pad)
    idx_p = idx_p.reshape(num_n_tiles, 1, tile_n)    # lane-major index tiles

    # Keep the whole index resident in VMEM (single DMA, constant index_map)
    # when it is small; fall back to per-step streaming for very large N.
    idx_bytes = num_n_tiles * tile_n * 4
    idx_resident = idx_bytes <= (4 << 20)
    if idx_resident:
        idx_spec = pl.BlockSpec((num_n_tiles, 1, tile_n), lambda d, n: (0, 0, 0))
    else:
        idx_spec = pl.BlockSpec((1, 1, tile_n), lambda d, n: (n, 0, 0))

    # Feature spec; optional deeper buffering for HBM-bound configs (f32 / v5e).
    if feature_buffers is None:
        feat_spec = pl.BlockSpec((tile_n, tile_d), lambda d, n: (n, d))
    else:
        feat_spec = pl.BlockSpec((tile_n, tile_d), lambda d, n: (n, d),
                                 pipeline_mode=pl.Buffered(int(feature_buffers)))

    feat_bytes = jnp.dtype(features.dtype).itemsize
    out_bytes = jnp.dtype(out_dtype).itemsize
    f32_upcast = 0 if features.dtype in (jnp.bfloat16, jnp.float32) else 1
    n_feat_bufs = 2 if feature_buffers is None else max(2, int(feature_buffers))
    vmem_est = (
        n_feat_bufs * tile_n * tile_d * feat_bytes       # pipelined feature tiles
        + (idx_bytes if idx_resident else 2 * tile_n * 4)
        + 2 * s_pad * tile_d * out_bytes                 # output block buffers
        + s_pad * tile_d * 4 + s_pad * 4                 # f32 accumulator scratch
        + 3 * s_pad * tile_n * 4                         # iota / mask / one-hot temps
        + (1 + f32_upcast) * tile_n * tile_d * 4         # masked / upcast feature temp
    )
    vmem_limit = int(min(max(2 * vmem_est, 8 << 20), 48 << 20))

    kernel = functools.partial(
        _reduce_state_kernel, reducer=reducer, num_n_tiles=num_n_tiles,
        rows_in_last=rows_in_last, idx_resident=idx_resident)

    out_p = pl.pallas_call(
        kernel,
        out_shape=jax.ShapeDtypeStruct((s_pad, d_out), out_dtype),
        grid_spec=pltpu.PrefetchScalarGridSpec(
            num_scalar_prefetch=0,
            grid=(d_tiles, num_n_tiles),        # (parallel D, reduction N last)
            in_specs=[idx_spec, feat_spec],
            out_specs=pl.BlockSpec((s_pad, tile_d), lambda d, n: (0, d)),
            scratch_shapes=[
                pltpu.VMEM((s_pad, tile_d), jnp.float32),
                pltpu.VMEM((s_pad, 1), jnp.float32),
            ],
        ),
        compiler_params=pltpu.CompilerParams(
            dimension_semantics=("parallel", "arbitrary"),
            vmem_limit_bytes=vmem_limit,
        ),
    )(idx_p, features)

    return out_p[:num_segments, :D]


if __name__ == "__main__":
    key = jax.random.PRNGKey(0)
    k1, k2 = jax.random.split(key)

    # Small, deliberately non-aligned shapes: exercise the unpadded-feature path
    # (partial n/d blocks), padded-output slicing, and a multi-step grid.
    N, D, S = 300, 300, 5
    features = jax.random.normal(k1, (N, D), dtype=jnp.float32)
    index = jax.random.randint(k2, (N,), 0, S, dtype=jnp.int32)

    # Pure-JAX references (scatter along dim 0).
    ref_sum = jax.ops.segment_sum(features, index, num_segments=S)
    counts = jax.ops.segment_sum(jnp.ones((N,), jnp.float32), index, num_segments=S)
    ref_mean = ref_sum / jnp.maximum(counts, 1.0)[:, None]

    # 1) mean, default tiles (single-step grid, partial blocks on both axes).
    out_mean = jax.block_until_ready(
        reduce_state(features, index, num_segments=S, reducer="mean"))
    assert out_mean.shape == (S, D) and out_mean.dtype == features.dtype
    assert jnp.allclose(out_mean, ref_mean, atol=1e-4, rtol=1e-4), "mean mismatch"

    # 2) sum, small tiles (multi-step grid: 2 d-steps x 3 n-steps with tails).
    out_sum = jax.block_until_ready(
        reduce_state(features, index, num_segments=S, reducer="sum",
                     tile_n=128, tile_d=256))
    assert out_sum.shape == (S, D)
    assert jnp.allclose(out_sum, ref_sum, atol=1e-4, rtol=1e-4), "sum mismatch"

    # 3) bf16 fast path (bf16 one-hot straight into the MXU, f32 accumulation).
    feat_bf16 = features.astype(jnp.bfloat16)
    out_bf16 = jax.block_until_ready(
        reduce_state(feat_bf16, index, num_segments=S, reducer="mean"))
    ref_bf16 = (jax.ops.segment_sum(feat_bf16.astype(jnp.float32), index,
                                    num_segments=S)
                / jnp.maximum(counts, 1.0)[:, None])
    assert out_bf16.dtype == jnp.bfloat16
    assert jnp.allclose(out_bf16.astype(jnp.float32), ref_bf16,
                        atol=2e-2, rtol=2e-2), "bf16 mean mismatch"

    print("KERNEL_OK")
</pallas_src>

<mosaic_0001>
module attributes {stable_mosaic.version = 11 : i64} {
  func.func @_reduce_state_kernel(%arg0: i32, %arg1: i32, %arg2: memref<1x1x384xi32, #tpu.memory_space<vmem>>, %arg3: memref<384x384xf32, #tpu.memory_space<vmem>>, %arg4: memref<8x384xf32, #tpu.memory_space<vmem>>, %arg5: memref<8x384xf32, #tpu.memory_space<vmem>>, %arg6: memref<8x1xf32, #tpu.memory_space<vmem>>) attributes {dimension_semantics = [#tpu.dimension_semantics<parallel>, #tpu.dimension_semantics<arbitrary>], iteration_bounds = array<i64: 1, 1>, scalar_prefetch = 0 : i64, scratch_operands = 2 : i64, tpu.core_type = #tpu.core_type<tc>, window_params = [{pipeline_mode = #tpu.pipeline_mode<synchronous>, transform_indices = @transform_0, window_bounds = array<i64: 1, 1, 384>}, {transform_indices = @transform_1, window_bounds = array<i64: 384, 384>}, {transform_indices = @transform_2, window_bounds = array<i64: 8, 384>}]} {
    %c0_i32 = arith.constant 0 : i32
    %0 = arith.cmpi eq, %arg1, %c0_i32 : i32
    %1 = arith.extui %0 : i1 to i32
    %c0_i32_0 = arith.constant 0 : i32
    %2 = arith.cmpi ne, %1, %c0_i32_0 : i32
    scf.if %2 {
      %cst_17 = arith.constant 0.000000e+00 : f32
      %33 = vector.broadcast %cst_17 : f32 to vector<8x384xf32>
      %c0_18 = arith.constant 0 : index
      %c0_19 = arith.constant 0 : index
      %34 = vector.load %arg5[%c0_18, %c0_19] : memref<8x384xf32, #tpu.memory_space<vmem>>, vector<8x384xf32>
      tpu.vector_store %arg5[%c0_18, %c0_19], %33 {strides = array<i32>} : memref<8x384xf32, #tpu.memory_space<vmem>>, vector<8x384xf32>,
      %cst_20 = arith.constant 0.000000e+00 : f32
      %35 = vector.broadcast %cst_20 : f32 to vector<8x1xf32>
      %c0_21 = arith.constant 0 : index
      %c0_22 = arith.constant 0 : index
      %36 = vector.load %arg6[%c0_21, %c0_22] : memref<8x1xf32, #tpu.memory_space<vmem>>, vector<8x1xf32>
      tpu.vector_store %arg6[%c0_21, %c0_22], %35 {strides = array<i32>} : memref<8x1xf32, #tpu.memory_space<vmem>>, vector<8x1xf32>,
    } else {
    }
    %3 = arith.index_cast %arg1 : i32 to index
    %c0 = arith.constant 0 : index
    %c0_1 = arith.constant 0 : index
    %4 = vector.load %arg2[%3, %c0, %c0_1] : memref<1x1x384xi32, #tpu.memory_space<vmem>>, vector<1x1x384xi32>
    %5 = vector.shape_cast %4 : vector<1x1x384xi32> to vector<1x384xi32>
    %6 = tpu.iota {dimensions = array<i32: 0>} : vector<8x384xi32>
    %7 = vector.broadcast %5 : vector<1x384xi32> to vector<8x384xi32>
    %8 = arith.cmpi eq, %6, %7 : vector<8x384xi32>
    %c0_2 = arith.constant 0 : index
    %c0_3 = arith.constant 0 : index
    %9 = vector.load %arg3[%c0_2, %c0_3] : memref<384x384xf32, #tpu.memory_space<vmem>>, vector<384x384xf32>
    %c0_i32_4 = arith.constant 0 : i32
    %10 = arith.cmpi eq, %arg1, %c0_i32_4 : i32
    %c300_i32 = arith.constant 300 : i32
    %c384_i32 = arith.constant 384 : i32
    %11 = arith.select %10, %c300_i32, %c384_i32 : i32
    %12 = tpu.iota {dimensions = array<i32: 0>} : vector<384x1xi32>
    %13 = vector.broadcast %11 : i32 to vector<384x1xi32>
    %14 = arith.cmpi slt, %12, %13 : vector<384x1xi32>
    %cst = arith.constant 0.000000e+00 : f32
    %15 = vector.shape_cast %14 : vector<384x1xi1> to vector<384x1xi1>
    %16 = vector.broadcast %15 : vector<384x1xi1> to vector<384x384xi1>
    %17 = vector.broadcast %cst : f32 to vector<384x384xf32>
    %18 = arith.select %16, %9, %17 : vector<384x384xi1>, vector<384x384xf32>
    %19 = arith.extui %8 : vector<8x384xi1> to vector<8x384xi32>
    %20 = arith.sitofp %19 : vector<8x384xi32> to vector<8x384xf32>
    %c0_5 = arith.constant 0 : index
    %c0_6 = arith.constant 0 : index
    %21 = vector.load %arg5[%c0_5, %c0_6] : memref<8x384xf32, #tpu.memory_space<vmem>>, vector<8x384xf32>
    %cst_7 = arith.constant dense<0.000000e+00> : vector<8x384xf32>
    %22 = tpu.matmul %20, %18, %cst_7 {dimension_numbers = #tpu.dot_dimension_numbers<[1], [0], [0], [1], [0, 0, 1, 1], [], []>} : vector<8x384xf32>, vector<384x384xf32>, vector<8x384xf32> -> vector<8x384xf32>
    %23 = arith.addf %21, %22 : vector<8x384xf32>
    %c0_8 = arith.constant 0 : index
    %c0_9 = arith.constant 0 : index
    %24 = vector.load %arg5[%c0_8, %c0_9] : memref<8x384xf32, #tpu.memory_space<vmem>>, vector<8x384xf32>
    tpu.vector_store %arg5[%c0_8, %c0_9], %23 {strides = array<i32>} : memref<8x384xf32, #tpu.memory_space<vmem>>, vector<8x384xf32>,
    %c0_10 = arith.constant 0 : index
    %c0_11 = arith.constant 0 : index
    %25 = vector.load %arg6[%c0_10, %c0_11] : memref<8x1xf32, #tpu.memory_space<vmem>>, vector<8x1xf32>
    %cst_12 = arith.constant dense<0.000000e+00> : vector<8xf32>
    %26 = vector.multi_reduction <add>, %20, %cst_12 [1] : vector<8x384xf32> to vector<8xf32>
    %27 = vector.shape_cast %26 : vector<8xf32> to vector<8x1xf32>
    %28 = arith.addf %25, %27 : vector<8x1xf32>
    %c0_13 = arith.constant 0 : index
    %c0_14 = arith.constant 0 : index
    %29 = vector.load %arg6[%c0_13, %c0_14] : memref<8x1xf32, #tpu.memory_space<vmem>>, vector<8x1xf32>
    tpu.vector_store %arg6[%c0_13, %c0_14], %28 {strides = array<i32>} : memref<8x1xf32, #tpu.memory_space<vmem>>, vector<8x1xf32>,
    %c0_i32_15 = arith.constant 0 : i32
    %30 = arith.cmpi eq, %arg1, %c0_i32_15 : i32
    %31 = arith.extui %30 : i1 to i32
    %c0_i32_16 = arith.constant 0 : i32
    %32 = arith.cmpi ne, %31, %c0_i32_16 : i32
    scf.if %32 {
      %c0_17 = arith.constant 0 : index
      %c0_18 = arith.constant 0 : index
      %33 = vector.load %arg6[%c0_17, %c0_18] : memref<8x1xf32, #tpu.memory_space<vmem>>, vector<8x1xf32>
      %cst_19 = arith.constant 1.000000e+00 : f32
      %34 = vector.broadcast %cst_19 : f32 to vector<8x1xf32>
      %35 = arith.maximumf %33, %34 : vector<8x1xf32>
      %c0_20 = arith.constant 0 : index
      %c0_21 = arith.constant 0 : index
      %36 = vector.load %arg5[%c0_20, %c0_21] : memref<8x384xf32, #tpu.memory_space<vmem>>, vector<8x384xf32>
      %37 = vector.broadcast %35 : vector<8x1xf32> to vector<8x384xf32>
      %38 = arith.divf %36, %37 : vector<8x384xf32>
      %c0_22 = arith.constant 0 : index
      %c0_23 = arith.constant 0 : index
      %39 = vector.load %arg4[%c0_22, %c0_23] : memref<8x384xf32, #tpu.memory_space<vmem>>, vector<8x384xf32>
      tpu.vector_store %arg4[%c0_22, %c0_23], %38 {strides = array<i32>} : memref<8x384xf32, #tpu.memory_space<vmem>>, vector<8x384xf32>,
    } else {
    }
    return
  }
  func.func @transform_0(%arg0: i32, %arg1: i32) -> (i32, i32, i32) {
    %c0_i32 = arith.constant 0 : i32
    %c0_i32_0 = arith.constant 0 : i32
    %c0_i32_1 = arith.constant 0 : i32
    %c0_i32_2 = arith.constant 0 : i32
    return %c0_i32, %c0_i32_0, %c0_i32_1 : i32, i32, i32
  }
  func.func @transform_1(%arg0: i32, %arg1: i32) -> (i32, i32) {
    %c0_i32 = arith.constant 0 : i32
    return %arg1, %arg0 : i32, i32
  }
  func.func @transform_2(%arg0: i32, %arg1: i32) -> (i32, i32) {
    %c0_i32 = arith.constant 0 : i32
    %c0_i32_0 = arith.constant 0 : i32
    return %c0_i32, %arg0 : i32, i32
  }
}

</mosaic_0001>

<bundles_post_ra>
// kernel: tpu_custom_call.1
= control target key start
LH: loop header
LB: loop body
LE: loop exit
PB: predicated region body
PF: predicated region fallthrough
CT: control target
= control target key end

     0   :  { %7 = vsyncpa [#allocation5], 0  ;;  %s989_s0 = inlined_call_operand.hbm [shape: s32[1,1,384], index: 0, kind: input, shape index: {}]   ;;  %s990_s1 = inlined_call_operand.hbm [shape: f32[300,300], index: 1, kind: input, shape index: {}]   ;;  %s991_s2 = inlined_call_operand.hbm [shape: f32[8,384], index: 2, kind: output, shape index: {}]  }
   0x1   :  { %8 = vsyncpa [#allocation8], 0 }
   0x2   :  { %9 = vsyncpa [#allocation6], 0  ;;  %s15_s11 = sshll.u32 %s989_s0, 4  ;;  %s901_s12 = smov [#allocation4]   ;;  %s16_s11 = int_to_ptr.hbm [resolvable:$true] %s15_s11 }
   0x3   :  { %s17_s13 = sshll.u32 %s901_s12, 4  ;;  %s18_s13 = int_to_ptr.vmem [resolvable:$true] %s17_s13 }
   0x4   :  { %20 = dma.hbm_to_vmem [thread:$0]  %s16_s11, 48, %s18_s13, [#allocation5]  }
   0x5   :  { %24 = vsyncadd [#allocation8], 3840  ;;  %s25_s16 = sshll.u32 %s990_s1, 4  ;;  %s902_s17 = smov [#allocation7]   ;;  %s26_s16 = int_to_ptr.hbm [resolvable:$true] %s25_s16 }
   0x6   :  { %s27_s18 = sshll.u32 %s902_s17, 4  ;;  %s903_s19 = smov 384   ;;  %s28_s18 = int_to_ptr.vmem [resolvable:$true] %s27_s18 }
   0x7   :  { %s904_s20 = smov 24  }
   0x8   :  { %33 = dma.hbm_to_vmem [thread:$0]  %s26_s16, 14592, %s28_s18, [#allocation8], %s903_s19, %s903_s19, %s904_s20  }
   0x9   :  { %895 = dma.done.wait [#allocation5], 48  }
   0xa   :  { %896 = vsyncadd [#allocation5], 4294967248 }
   0xb   :  { %897 = dma.done.wait [#allocation8], 18432  }
   0xc   :  { %898 = vsyncadd [#allocation8], 4294948864  ;;  %vm49_vm0 = vcmask 7168   ;;  %v54_v0 = vlaneseq  ;;  %v905_v1 = vmov 0.0   ;;  %v53_v4 = vld [vmem:[#allocation4] sm:$0x7] }
   0xd   :  { %50 = vst.msk [vmem:[#allocation3] sm:$0xff] %vm49_vm0, %v905_v1  ;;  %v108_v5 = vld [vmem:[#allocation7 + $0x170] sm:$0xff]  ;;  %v105_v6 = vld [vmem:[#allocation7 + $0x158] sm:$0xff]  ;;  %v56_v7 = vperm.slane %v53_v4, 0  ;;  %v57_v8 = vperm.slane %v53_v4, 1  ;;  %v58_v9 = vperm.slane %v53_v4, 2 }
   0xe   :  { %v55_v2 = vshrl.u32 %v54_v0, 7  ;;  %612 = vmatpush.msra.mxu3 %v108_v5  ;;  %v155_v10 = vld [vmem:[#allocation7 + $0x2e8] sm:$0xff]  ;;  %v102_v11 = vld [vmem:[#allocation7 + $0x140] sm:$0xff]  ;;  %v152_v12 = vld [vmem:[#allocation7 + $0x2d0] sm:$0xff]  ;;  %s908_s0 = smov [#allocation9]   ;;  %s786_s23 = sshll.u32 %s991_s2, 4  ;;  %s787_s23 = int_to_ptr.hbm [resolvable:$true] %s786_s23 }
   0xf   :  { %572 = vmatpush.msra.mxu1 %v155_v10  ;;  %v149_v16 = vld [vmem:[#allocation7 + $0x2b8] sm:$0xff]  ;;  %v99_v21 = vld [vmem:[#allocation7 + $0x128] sm:$0xff]  ;;  %v170_v22 = vld [vmem:[#allocation7 + $0x360] sm:$0xff]  ;;  %s784_s1 = sshll.u32 %s908_s0, 4  ;;  %s785_s1 = int_to_ptr.vmem [resolvable:$true] %s784_s1 }
  0x10   :  { %v931_v3 = vadd.s32 296, %v55_v2  ;;  %vm934_vm2 = vcmp.eq.s32.totalorder %v55_v2, %v56_v7  ;;  %vm938_vm3 = vcmp.eq.s32.totalorder %v55_v2, %v57_v8  ;;  %vm942_vm4 = vcmp.eq.s32.totalorder %v55_v2, %v58_v9  ;;  %613 = vmatpush.msra.mxu3 %v105_v6  ;;  %v173_v17 = vld [vmem:[#allocation7 + $0x378] sm:$0xff]  ;;  %v146_v24 = vld [vmem:[#allocation7 + $0x2a0] sm:$0xff]  ;;  %v167_v25 = vld [vmem:[#allocation7 + $0x348] sm:$0xff] }
  0x11   :  { %v797_v18 = vsel %vm934_vm2, 1.0, %v905_v1  ;;  %v798_v19 = vsel %vm938_vm3, 1.0, %v905_v1  ;;  %v799_v20 = vsel %vm942_vm4, 1.0, %v905_v1  ;;  %573 = vmatpush.msra.mxu1 %v152_v12  ;;  %v96_v26 = vld [vmem:[#allocation7 + $0x110] sm:$0xff]  ;;  %v107_v27 = vld [vmem:[#allocation7 + $0x168] sm:$0xff]  ;;  %v93_v31 = vld [vmem:[#allocation7 + $0xf8] sm:$0xff] }
  0x12   :  { %vm292_vm1 = vcmp.lt.s32.totalorder %v931_v3, 300  ;;  %v739_v23 = vadd.f32 %v798_v19, %v797_v18  ;;  %614 = vmatpush.msra.mxu3 %v102_v11  ;;  %v143_v29 = vld [vmem:[#allocation7 + $0x288] sm:$0xff]  ;;  %552 = vmatpush.msra.mxu0 %v107_v27  ;;  %v164_v30 = vld [vmem:[#allocation7 + $0x330] sm:$0xff]  ;;  %v161_v34 = vld [vmem:[#allocation7 + $0x318] sm:$0xff] }
  0x13   :  { %802 = vmatpush.msk.msra.mxu2 %vm292_vm1, %v173_v17  ;;  %574 = vmatpush.msra.mxu1 %v149_v16  ;;  %v104_v32 = vld [vmem:[#allocation7 + $0x150] sm:$0xff]  ;;  %v90_v35 = vld [vmem:[#allocation7 + $0xe0] sm:$0xff]  ;;  %v101_v36 = vld [vmem:[#allocation7 + $0x138] sm:$0xff] }
  0x14   :  { %v740_v28 = vadd.f32 %v799_v20, %v739_v23  ;;  %615 = vmatpush.msra.mxu3 %v99_v21  ;;  %v140_v33 = vld [vmem:[#allocation7 + $0x270] sm:$0xff]  ;;  %v137_v37 = vld [vmem:[#allocation7 + $0x258] sm:$0xff]  ;;  %553 = vmatpush.msra.mxu0 %v104_v32  ;;  %v158_v38 = vld [vmem:[#allocation7 + $0x300] sm:$0xff] }
  0x15   :  { %603 = vmatpush.msra.mxu2 %v170_v22  ;;  %575 = vmatpush.msra.mxu1 %v146_v24  ;;  %v87_v39 = vld [vmem:[#allocation7 + $0xc8] sm:$0xff]  ;;  %v98_v40 = vld [vmem:[#allocation7 + $0x120] sm:$0xff]  ;;  %v156_v42 = vld [vmem:[#allocation7 + $0x2f0] sm:$0xff] }
  0x16   :  { %741 = vadd.xlane.f32.xlu0 %v740_v28  ;;  %616 = vmatpush.msra.mxu3 %v96_v26  ;;  %v134_v41 = vld [vmem:[#allocation7 + $0x240] sm:$0xff]  ;;  %v84_v43 = vld [vmem:[#allocation7 + $0xb0] sm:$0xff]  ;;  %v95_v44 = vld [vmem:[#allocation7 + $0x108] sm:$0xff] }
  0x17   :  { %604 = vmatpush.msra.mxu2 %v167_v25  ;;  %576 = vmatpush.msra.mxu1 %v143_v29  ;;  %v131_v45 = vld [vmem:[#allocation7 + $0x228] sm:$0xff]  ;;  %v153_v46 = vld [vmem:[#allocation7 + $0x2d8] sm:$0xff]  ;;  %v92_v48 = vld [vmem:[#allocation7 + $0xf0] sm:$0xff] }
  0x18   :  { %617 = vmatpush.msra.mxu3 %v93_v31  ;;  %554 = vmatpush.msra.mxu0 %v101_v36  ;;  %v81_v47 = vld [vmem:[#allocation7 + $0x98] sm:$0xff]  ;;  %v128_v49 = vld [vmem:[#allocation7 + $0x210] sm:$0xff]  ;;  %v150_v50 = vld [vmem:[#allocation7 + $0x2c0] sm:$0xff] }
  0x19   :  { %605 = vmatpush.msra.mxu2 %v164_v30  ;;  %577 = vmatpush.msra.mxu1 %v140_v33  ;;  %v78_v51 = vld [vmem:[#allocation7 + $0x80] sm:$0xff]  ;;  %v89_v52 = vld [vmem:[#allocation7 + $0xd8] sm:$0xff]  ;;  %v147_v54 = vld [vmem:[#allocation7 + $0x2a8] sm:$0xff] }
  0x1a   :  { %618 = vmatpush.msra.mxu3 %v90_v35  ;;  %555 = vmatpush.msra.mxu0 %v98_v40  ;;  %v125_v53 = vld [vmem:[#allocation7 + $0x1f8] sm:$0xff]  ;;  %v75_v55 = vld [vmem:[#allocation7 + $0x68] sm:$0xff]  ;;  %v86_v56 = vld [vmem:[#allocation7 + $0xc0] sm:$0xff] }
  0x1b   :  { %606 = vmatpush.msra.mxu2 %v161_v34  ;;  %578 = vmatpush.msra.mxu1 %v137_v37  ;;  %v122_v57 = vld [vmem:[#allocation7 + $0x1e0] sm:$0xff]  ;;  %v144_v58 = vld [vmem:[#allocation7 + $0x290] sm:$0xff]  ;;  %v83_v60 = vld [vmem:[#allocation7 + $0xa8] sm:$0xff]  ;;  %v906_v34 = vmov 1.0  }
  0x1c   :  { %619 = vmatpush.msra.mxu3 %v87_v39  ;;  %556 = vmatpush.msra.mxu0 %v95_v44  ;;  %v72_v59 = vld [vmem:[#allocation7 + $0x50] sm:$0xff]  ;;  %v119_v61 = vld [vmem:[#allocation7 + $0x1c8] sm:$0xff]  ;;  %v141_v62 = vld [vmem:[#allocation7 + $0x278] sm:$0xff] }
  0x1d   :  { %607 = vmatpush.msra.mxu2 %v158_v38  ;;  %579 = vmatpush.msra.mxu1 %v134_v41  ;;  %v69_v63 = vld [vmem:[#allocation7 + $0x38] sm:$0xff]  ;;  %v80_v0 = vld [vmem:[#allocation7 + $0x90] sm:$0xff]  ;;  %v138_v2 = vld [vmem:[#allocation7 + $0x260] sm:$0xff] }
  0x1e   :  { %620 = vmatpush.msra.mxu3 %v84_v43  ;;  %557 = vmatpush.msra.mxu0 %v92_v48  ;;  %v116_v1 = vld [vmem:[#allocation7 + $0x1b0] sm:$0xff]  ;;  %v66_v4 = vld [vmem:[#allocation7 + $0x20] sm:$0xff]  ;;  %v77_v5 = vld [vmem:[#allocation7 + $0x78] sm:$0xff] }
  0x1f   :  { %632 = vmatpush.msrb.mxu2 %v156_v42  ;;  %580 = vmatpush.msra.mxu1 %v131_v45  ;;  %v113_v6 = vld [vmem:[#allocation7 + $0x198] sm:$0xff]  ;;  %v135_v7 = vld [vmem:[#allocation7 + $0x248] sm:$0xff]  ;;  %v74_v9 = vld [vmem:[#allocation7 + $0x60] sm:$0xff] }
  0x20   :  { %621 = vmatpush.msra.mxu3 %v81_v47  ;;  %558 = vmatpush.msra.mxu0 %v89_v52  ;;  %v63_v8 = vld [vmem:[#allocation7 + $0x8] sm:$0xff]  ;;  %v157_v10 = vld [vmem:[#allocation7 + $0x2f8] sm:$0xff]  ;;  %v110_v11 = vld [vmem:[#allocation7 + $0x180] sm:$0xff] }
  0x21   :  { %633 = vmatpush.msrb.mxu2 %v153_v46  ;;  %581 = vmatpush.msra.mxu1 %v128_v49  ;;  %v109_v12 = vld [vmem:[#allocation7 + $0x178] sm:$0xff]  ;;  %v132_v16 = vld [vmem:[#allocation7 + $0x230] sm:$0xff]  ;;  %v154_v17 = vld [vmem:[#allocation7 + $0x2e0] sm:$0xff] }
  0x22   :  { %622 = vmatpush.msra.mxu3 %v78_v51  ;;  %559 = vmatpush.msra.mxu0 %v86_v56  ;;  %v71_v18 = vld [vmem:[#allocation7 + $0x48] sm:$0xff]  ;;  %v106_v19 = vld [vmem:[#allocation7 + $0x160] sm:$0xff]  ;;  %v129_v20 = vld [vmem:[#allocation7 + $0x218] sm:$0xff] }
  0x23   :  { %634 = vmatpush.msrb.mxu2 %v150_v50  ;;  %582 = vmatpush.msra.mxu1 %v125_v53  ;;  %v151_v21 = vld [vmem:[#allocation7 + $0x2c8] sm:$0xff]  ;;  %v68_v22 = vld [vmem:[#allocation7 + $0x30] sm:$0xff]  ;;  %v126_v24 = vld [vmem:[#allocation7 + $0x200] sm:$0xff] }
  0x24   :  { %623 = vmatpush.msra.mxu3 %v75_v55  ;;  %560 = vmatpush.msra.mxu0 %v83_v60  ;;  %v103_v23 = vld [vmem:[#allocation7 + $0x148] sm:$0xff]  ;;  %v148_v25 = vld [vmem:[#allocation7 + $0x2b0] sm:$0xff]  ;;  %v65_v26 = vld [vmem:[#allocation7 + $0x18] sm:$0xff] }
  0x25   :  { %635 = vmatpush.msrb.mxu2 %v147_v54  ;;  %583 = vmatpush.msra.mxu1 %v122_v57  ;;  %v100_v27 = vld [vmem:[#allocation7 + $0x130] sm:$0xff]  ;;  %v123_v28 = vld [vmem:[#allocation7 + $0x1e8] sm:$0xff]  ;;  %v145_v29 = vld [vmem:[#allocation7 + $0x298] sm:$0xff] }
  0x26   :  { %624 = vmatpush.msra.mxu3 %v72_v59  ;;  %561 = vmatpush.msra.mxu0 %v80_v0  ;;  %v97_v30 = vld [vmem:[#allocation7 + $0x118] sm:$0xff]  ;;  %v62_v31 = vld [vmem:[#allocation7] sm:$0xff]  ;;  %v120_v33 = vld [vmem:[#allocation7 + $0x1d0] sm:$0xff] }
  0x27   :  { %636 = vmatpush.msrb.mxu2 %v144_v58  ;;  %584 = vmatpush.msra.mxu1 %v119_v61  ;;  %v142_v32 = vld [vmem:[#allocation7 + $0x280] sm:$0xff]  ;;  %v139_v37 = vld [vmem:[#allocation7 + $0x268] sm:$0xff]  ;;  %v117_v38 = vld [vmem:[#allocation7 + $0x1b8] sm:$0xff] }
  0x28   :  { %625 = vmatpush.msra.mxu3 %v69_v63  ;;  %562 = vmatpush.msra.mxu0 %v77_v5  ;;  %v94_v35 = vld [vmem:[#allocation7 + $0x100] sm:$0xff]  ;;  %v91_v39 = vld [vmem:[#allocation7 + $0xe8] sm:$0xff]  ;;  %v136_v41 = vld [vmem:[#allocation7 + $0x250] sm:$0xff]  ;;  %v907_v63 = vmov 0  }
  0x29   :  { %637 = vmatpush.msrb.mxu2 %v141_v62  ;;  %585 = vmatpush.msra.mxu1 %v116_v1  ;;  %v174_v36 = vld [vmem:[#allocation7 + $0x380] sm:$0xff]  ;;  %v171_v40 = vld [vmem:[#allocation7 + $0x368] sm:$0xff]  ;;  %v88_v43 = vld [vmem:[#allocation7 + $0xd0] sm:$0xff] }
  0x2a   :  { %626 = vmatpush.msra.mxu3 %v66_v4  ;;  %563 = vmatpush.msra.mxu0 %v74_v9  ;;  %v114_v42 = vld [vmem:[#allocation7 + $0x1a0] sm:$0xff]  ;;  %v168_v44 = vld [vmem:[#allocation7 + $0x350] sm:$0xff]  ;;  %v133_v45 = vld [vmem:[#allocation7 + $0x238] sm:$0xff] }
  0x2b   :  { %638 = vmatpush.msrb.mxu2 %v138_v2  ;;  %586 = vmatpush.msra.mxu1 %v113_v6  ;;  %v111_v46 = vld [vmem:[#allocation7 + $0x188] sm:$0xff]  ;;  %v85_v47 = vld [vmem:[#allocation7 + $0xb8] sm:$0xff]  ;;  %v130_v48 = vld [vmem:[#allocation7 + $0x220] sm:$0xff] }
  0x2c   :  { %627 = vmatpush.msra.mxu3 %v63_v8  ;;  %564 = vmatpush.msra.mxu0 %v71_v18  ;;  %v127_v49 = vld [vmem:[#allocation7 + $0x208] sm:$0xff]  ;;  %v124_v50 = vld [vmem:[#allocation7 + $0x1f0] sm:$0xff]  ;;  %v165_v51 = vld [vmem:[#allocation7 + $0x338] sm:$0xff] }
  0x2d   :  { %639 = vmatpush.msrb.mxu2 %v135_v7  ;;  %587 = vmatpush.msra.mxu1 %v110_v11  ;;  %v82_v52 = vld [vmem:[#allocation7 + $0xa0] sm:$0xff]  ;;  %v121_v53 = vld [vmem:[#allocation7 + $0x1d8] sm:$0xff]  ;;  %v79_v55 = vld [vmem:[#allocation7 + $0x88] sm:$0xff] }
  0x2e   :  { %692 = vmatpush.msrb.mxu3 %v157_v10  ;;  %565 = vmatpush.msra.mxu0 %v68_v22  ;;  %v162_v54 = vld [vmem:[#allocation7 + $0x320] sm:$0xff]  ;;  %v159_v57 = vld [vmem:[#allocation7 + $0x308] sm:$0xff]  ;;  %v76_v58 = vld [vmem:[#allocation7 + $0x70] sm:$0xff] }
  0x2f   :  { %672 = vmatpush.msrb.mxu1 %v109_v12  ;;  %640 = vmatpush.msrb.mxu2 %v132_v16  ;;  %v118_v56 = vld [vmem:[#allocation7 + $0x1c0] sm:$0xff]  ;;  %v115_v59 = vld [vmem:[#allocation7 + $0x1a8] sm:$0xff]  ;;  %v73_v61 = vld [vmem:[#allocation7 + $0x58] sm:$0xff] }
  0x30   :  { %693 = vmatpush.msrb.mxu3 %v154_v17  ;;  %566 = vmatpush.msra.mxu0 %v65_v26  ;;  %v175_v60 = vld [vmem:[#allocation7 + $0x388] sm:$0xff]  ;;  %v112_v62 = vld [vmem:[#allocation7 + $0x190] sm:$0xff]  ;;  %v70_v1 = vld [vmem:[#allocation7 + $0x40] sm:$0xff] }
  0x31   :  { %673 = vmatpush.msrb.mxu1 %v106_v19  ;;  %641 = vmatpush.msrb.mxu2 %v129_v20  ;;  %v172_v0 = vld [vmem:[#allocation7 + $0x370] sm:$0xff]  ;;  %v169_v2 = vld [vmem:[#allocation7 + $0x358] sm:$0xff]  ;;  %v67_v4 = vld [vmem:[#allocation7 + $0x28] sm:$0xff] }
  0x32   :  { %694 = vmatpush.msrb.mxu3 %v151_v21  ;;  %803 = vmatmul.msk.f32.vlgmr.msra.gmra.mxu2 %vm942_vm4, %v906_v34  ;;  %v166_v5 = vld [vmem:[#allocation7 + $0x340] sm:$0xff]  ;;  %v64_v3 = vld [vmem:[#allocation7 + $0x10] sm:$0xff]  ;;  %v163_v6 = vld [vmem:[#allocation7 + $0x328] sm:$0xff] }
  0x33   :  { %674 = vmatpush.msrb.mxu1 %v103_v23  ;;  %642 = vmatpush.msrb.mxu2 %v126_v24  ;;  %v160_v7 = vld [vmem:[#allocation7 + $0x310] sm:$0xff] }
  0x34   :  { %695 = vmatpush.msrb.mxu3 %v148_v25  ;;  %567 = vmatpush.msra.mxu0 %v62_v31  ;;  %v738_v14 = vld [vmem:[#allocation3] sm:$0xff] }
  0x35   :  { %675 = vmatpush.msrb.mxu1 %v100_v27  ;;  %643 = vmatpush.msrb.mxu2 %v123_v28 }
  0x36   :  { %696 = vmatpush.msrb.mxu3 %v145_v29  ;;  %806 = vmatpush.msk.msrb.mxu0 %vm292_vm1, %v174_v36 }
  0x37   :  { %676 = vmatpush.msrb.mxu1 %v97_v30  ;;  %644 = vmatpush.msrb.mxu2 %v120_v33 }
  0x38   :  { %697 = vmatpush.msrb.mxu3 %v142_v32  ;;  %663 = vmatpush.msrb.mxu0 %v171_v40 }
  0x39   :  { %677 = vmatpush.msrb.mxu1 %v94_v35  ;;  %645 = vmatpush.msrb.mxu2 %v117_v38 }
  0x3a   :  { %698 = vmatpush.msrb.mxu3 %v139_v37  ;;  %664 = vmatpush.msrb.mxu0 %v168_v44 }
  0x3b   :  { %678 = vmatpush.msrb.mxu1 %v91_v39  ;;  %646 = vmatpush.msrb.mxu2 %v114_v42 }
  0x3c   :  { %699 = vmatpush.msrb.mxu3 %v136_v41  ;;  %800 = vmatmul.msk.f32.vlgmr.msra.gmra.mxu0 %vm934_vm2, %v906_v34 }
  0x3d   :  { %679 = vmatpush.msrb.mxu1 %v88_v43  ;;  %647 = vmatpush.msrb.mxu2 %v111_v46 }
  0x3e   :  { %700 = vmatpush.msrb.mxu3 %v133_v45  ;;  %801 = vmatmul.msk.f32.vlgmr.msra.gmra.mxu1 %vm938_vm3, %v906_v34 }
  0x3f   :  { %680 = vmatpush.msrb.mxu1 %v85_v47  ;;  %804 = vmatmul.msk.f32.vlgmr.msra.gmra.mxu3 %vm934_vm2, %v906_v34 }
  0x40   :  { %701 = vmatpush.msrb.mxu3 %v130_v48  ;;  %805 = vmatmul.msk.f32.vlgmr.msrb.gmra.mxu2 %vm938_vm3, %v906_v34 }
  0x41   :  { %665 = vmatpush.msrb.mxu0 %v165_v51  ;;  %681 = vmatpush.msrb.mxu1 %v82_v52 }
  0x42   :  { %702 = vmatpush.msrb.mxu3 %v127_v49  ;;  %820 = vset.pattern.permute.xlu0 %v907_v63 }
  0x43   :  { %666 = vmatpush.msrb.mxu0 %v162_v54  ;;  %682 = vmatpush.msrb.mxu1 %v79_v55 }
  0x44   :  { %703 = vmatpush.msrb.mxu3 %v124_v50 }
  0x45   :  { %667 = vmatpush.msrb.mxu0 %v159_v57  ;;  %683 = vmatpush.msrb.mxu1 %v76_v58 }
  0x46   :  { %704 = vmatpush.msrb.mxu3 %v121_v53  ;;  %807 = vmatmul.msk.f32.vlgmr.msrb.gmra.mxu0 %vm942_vm4, %v906_v34 }
  0x47   :  { %810 = vmatpush.msk.msra.mxu0 %vm292_vm1, %v175_v60  ;;  %684 = vmatpush.msrb.mxu1 %v73_v61 }
  0x48   :  { %705 = vmatpush.msrb.mxu3 %v118_v56 }
  0x49   :  { %723 = vmatpush.msra.mxu0 %v172_v0  ;;  %685 = vmatpush.msrb.mxu1 %v70_v1 }
  0x4a   :  { %706 = vmatpush.msrb.mxu3 %v115_v59 }
  0x4b   :  { %724 = vmatpush.msra.mxu0 %v169_v2  ;;  %686 = vmatpush.msrb.mxu1 %v67_v4 }
  0x4c   :  { %707 = vmatpush.msrb.mxu3 %v112_v62 }
  0x4d   :  { %809 = vmatmul.msk.f32.vlgmr.msrb.gmra.mxu3 %vm938_vm3, %v906_v34  ;;  %725 = vmatpush.msra.mxu0 %v166_v5 }
  0x4e   :  { %687 = vmatpush.msrb.mxu1 %v64_v3 }
  0x4f   :  { %726 = vmatpush.msra.mxu0 %v163_v6  ;;  %808 = vmatmul.msk.f32.vlgmr.msrb.gmra.mxu1 %vm934_vm2, %v906_v34 }
  0x51   :  { %727 = vmatpush.msra.mxu0 %v160_v7 }
  0x52   :  { %811 = vmatmul.msk.f32.vlgmr.msra.gmra.mxu0 %vm942_vm4, %v906_v34 }
  0x89   :  { %v742_v8 = vpop.xlane.xlu0 %741 }
  0x8a   :  { %v743_v9 = vadd.f32 %v742_v8, %v738_v14 }
  0x8c   :  { %745 = vst.msk [vmem:[#allocation3] sm:$0xff] %vm49_vm0, %v743_v9 }
  0x93   :  { %v749_v10 = vld [vmem:[#allocation3] sm:$0xff] }
  0x94   :  { %v750_v11 = vmax.f32 %v749_v10, 1.0 }
  0x96   :  { %756 = vperm.xlu0 %820, %v750_v11  }
  0xb5   :  { %v609_v17 = vpop.f32.mrf.mxu2 }
  0xb9   :  { %v569_v12 = vpop.f32.mrf.mxu0 }
  0xbb   :  { %v589_v18 = vpop.f32.mrf.mxu1 }
  0xbc   :  { %v590_v26 = vadd.f32 %v589_v18, %v569_v12 }
  0xbe   :  { %v610_v35 = vadd.f32 %v609_v17, %v590_v26 }
  0xc2   :  { %v629_v16 = vpop.f32.mrf.mxu3 }
  0xc3   :  { %v669_v13 = vpop.f32.mrf.mxu0  ;;  %v649_v23 = vpop.f32.mrf.mxu2 }
  0xc4   :  { %v650_v31 = vadd.f32 %v649_v23, %v629_v16 }
  0xc6   :  { %v670_v36 = vadd.f32 %v669_v13, %v650_v31 }
  0xcc   :  { %v689_v21 = vpop.f32.mrf.mxu1 }
  0xcf   :  { %v729_v28 = vpop.f32.mrf.mxu0 }
  0xd0   :  { %v709_v22 = vpop.f32.mrf.mxu3 }
  0xd1   :  { %v710_v25 = vadd.f32 %v709_v22, %v689_v21 }
  0xd3   :  { %v730_v33 = vadd.f32 %v729_v28, %v710_v25 }
 0x108   :  { %v757_v19 = vpop.permute.xlu0 %756 }
 0x109   :  { %821 = vrcp.f32 %v757_v19  ;;  %v770_v27 = vand.u32 2147483648, %v757_v19  ;;  %v768_v30 = vand.u32 2147483647, %v757_v19  ;;  %vm764_vm6 = vweird.f32 %v757_v19 }
 0x10b   :  { %v771_v34 = vor.u32 1.1754944e-38, %v770_v27  ;;  %vm769_vm8 = vcmp.eq.f32.partialorder %v768_v30, 8.507059e+37 }
 0x10f   :  { %v822_v20 = vpop.eup %821 }
 0x110   :  { %v760_v15 = vmul.f32 %v822_v20, %v757_v19  ;;  %vm765_vm5 = vweird.f32 %v822_v20 }
 0x111   :  { %vm766_vm7 = vmor %vm764_vm6, %vm765_vm5 }
 0x112   :  { %v761_v24 = vsub.f32 1.0, %v760_v15 }
 0x114   :  { %v762_v29 = vmul.f32 %v822_v20, %v761_v24 }
 0x116   :  { %v763_v32 = vadd.f32 %v822_v20, %v762_v29 }
 0x118   :  { %v767_v37 = vsel %vm766_vm7, %v822_v20, %v763_v32 }
 0x119   :  { %v772_v38 = vsel %vm769_vm8, %v771_v34, %v767_v37 }
 0x11a   :  { %v773_v39 = vmul.f32 %v772_v38, %v610_v35  ;;  %v774_v40 = vmul.f32 %v772_v38, %v670_v36  ;;  %v775_v41 = vmul.f32 %v772_v38, %v730_v33 }
 0x11c   :  { %777 = vst [vmem:[#allocation9 + $0x8] sm:$0xff] %v774_v40 }
 0x11d   :  { %776 = vst [vmem:[#allocation9] sm:$0xff] %v773_v39 }
 0x11e   :  { %778 = vst [vmem:[#allocation9 + $0x10] sm:$0xff] %v775_v41 }
 0x11f   :  { %789 = dma.vmem_to_hbm [thread:$0]  %s785_s1, 384, %s787_s23, [#allocation6]  }
 0x120   :  { %899 = dma.done.wait [#allocation6], 384  }
 0x121   :  { %900 = vsyncadd [#allocation6], 4294966912 }
 0x122   :  { %794 = vsyncpa [#allocation5], 1 }
 0x123   :  { %795 = vsyncpa [#allocation8], 1 }
 0x124   :  { %796 = vsyncpa [#allocation6], 1 }

</bundles_post_ra>
